<compile_context>
chip_gen: v7x
topology: tpu7x:2x2x1
jax: 0.10.0
libtpu: 0.0.40
codegen_flags: <defaults>
</compile_context>

<pallas_src>
import functools

import jax
import jax.numpy as jnp
from jax.experimental import pallas as pl
from jax.experimental.pallas import tpu as pltpu

LANE = 128
SUBLANE = 8


# ----------------------------- Pallas kernel --------------------------------
def _make_fused_kernel(num_layers):
    """Build a fused kernel for `num_layers` Linear->ReLU(->BN) layers.

    Ref layout (positional):
      refs[0]                      x_ref    (B, F_in)
      refs[1 : 1+num_layers]       w_refs   layer i weight, (F_in_i, H_pad)
      refs[1+num_layers]           vec_ref  (num_layers+2, H_pad):
                                     rows 0..num_layers-1 : folded biases
                                     row  num_layers      : last-layer BN scale
                                     row  num_layers+1    : last-layer BN shift
      refs[2+num_layers]           o_ref    (B, H_pad)
    """

    def kernel(*refs):
        x_ref = refs[0]
        w_refs = refs[1:1 + num_layers]
        vec_ref = refs[1 + num_layers]
        o_ref = refs[2 + num_layers]

        z = x_ref[...]
        # Static unroll: tiny per-layer epilogue, activation never leaves VMEM.
        for i in range(num_layers):
            y = jnp.dot(z, w_refs[i][...], preferred_element_type=jnp.float32)
            y = y + vec_ref[i:i + 1, :]          # bias (prev BN affine pre-folded in)
            z = jnp.maximum(y, 0.0)              # ReLU
        # Last layer's eval-mode BatchNorm1d affine.
        scale = vec_ref[num_layers:num_layers + 1, :]
        shift = vec_ref[num_layers + 1:num_layers + 2, :]
        o_ref[...] = z * scale + shift

    return kernel


def _fused_forward_call(x, wts, vecs):
    """One pallas_call for the whole encoder. Shapes are tiny -> full-array blocks."""
    B = x.shape[0]
    H_pad = wts[0].shape[1]
    num_layers = len(wts)
    vmem = pl.BlockSpec(memory_space=pltpu.MemorySpace.VMEM)
    return pl.pallas_call(
        _make_fused_kernel(num_layers),
        out_shape=jax.ShapeDtypeStruct((B, H_pad), jnp.float32),
        in_specs=[vmem] * (num_layers + 2),
        out_specs=vmem,
    )(x, *wts, vecs)


# --------------------------- Parameter construction --------------------------
def _make_linear_params(key, fan_in, fan_out):
    kw, kb = jax.random.split(key)
    bound = 1.0 / jnp.sqrt(fan_in)
    w = jax.random.uniform(kw, (fan_out, fan_in), jnp.float32, -bound, bound)
    b = jax.random.uniform(kb, (fan_out,), jnp.float32, -bound, bound)
    return w, b


def _make_bn_params(key, num_features, eps=1e-5):
    kg, kb, km, kv = jax.random.split(key, 4)
    gamma = 1.0 + 0.1 * jax.random.normal(kg, (num_features,), jnp.float32)
    beta = 0.1 * jax.random.normal(kb, (num_features,), jnp.float32)
    running_mean = 0.1 * jax.random.normal(km, (num_features,), jnp.float32)
    running_var = 1.0 + 0.1 * jax.random.uniform(kv, (num_features,), jnp.float32)
    scale = gamma / jnp.sqrt(running_var + eps)
    shift = beta - running_mean * scale
    return scale, shift


def init_fcnn_encoder_params(key, num_inputs, num_hidden, num_deep):
    """Torch-style params: list of (w (out,in), b, bn_scale, bn_shift) per layer."""
    keys = jax.random.split(key, 2 * (num_deep + 1))
    params = []
    w, b = _make_linear_params(keys[0], num_inputs, num_hidden)
    scale, shift = _make_bn_params(keys[1], num_hidden)
    params.append((w, b, scale, shift))
    for d in range(num_deep):
        w, b = _make_linear_params(keys[2 + 2 * d], num_hidden, num_hidden)
        scale, shift = _make_bn_params(keys[3 + 2 * d], num_hidden)
        params.append((w, b, scale, shift))
    return params


def fold_params_for_kernel(params, num_hidden, lane=LANE):
    """Pre-transpose weights, fold BN_i into layer i+1, zero-pad hidden dim to `lane`.

    Fold rule (affine sits after ReLU, before the next matmul):
        (a*s + t) @ W^T  ==  a @ (s[:,None] * W^T)  +  (t @ W^T)
    Only the last layer keeps an explicit (scale, shift), applied in the kernel.
    """
    H_pad = max(lane, -(-num_hidden // lane) * lane)
    pad_h = H_pad - num_hidden
    wts, biases = [], []
    prev_scale = prev_shift = None
    for i, (w, b, scale, shift) in enumerate(params):
        wt = w.T                                   # (F_in, num_hidden)
        if i > 0:
            b = b + prev_shift @ wt                # fold previous BN shift
            wt = prev_scale[:, None] * wt          # fold previous BN scale
        prev_scale, prev_shift = scale, shift
        wt = jnp.pad(wt, ((0, 0), (0, pad_h)))     # pad output features
        if i > 0:
            wt = jnp.pad(wt, ((0, pad_h), (0, 0))) # padded input features are zero
        biases.append(jnp.pad(b, (0, pad_h)))
        wts.append(wt)
    vecs = jnp.stack(
        biases + [jnp.pad(prev_scale, (0, pad_h)), jnp.pad(prev_shift, (0, pad_h))],
        axis=0,
    )
    return tuple(wts), vecs


# ------------------------------- Forward pass --------------------------------
@functools.partial(jax.jit, static_argnames=("num_hidden",))
def fcnn_encoder_forward(x, wts, vecs, *, num_hidden):
    """Eval-mode FCNNEncoder forward as a single fused Pallas kernel."""
    B = x.shape[0]
    B_pad = -(-B // SUBLANE) * SUBLANE
    xp = jnp.pad(x, ((0, B_pad - B), (0, 0))) if B_pad != B else x
    out = _fused_forward_call(xp, wts, vecs)
    return out[:B, :num_hidden]


def fcnn_encoder_reference(x, params):
    """Plain-JAX reference with the ORIGINAL (unfolded, unpadded) parameters."""
    z = x
    for (w, b, scale, shift) in params:
        y = jnp.maximum(z @ w.T + b, 0.0)
        z = y * scale + shift
    return z


# ----------------------------------- Main -------------------------------------
if __name__ == "__main__":
    key = jax.random.PRNGKey(0)
    k_params, k_x = jax.random.split(key)

    batch = 8
    num_inputs = 16
    num_hidden = 32
    num_deep = 2

    params = init_fcnn_encoder_params(k_params, num_inputs, num_hidden, num_deep)
    wts, vecs = fold_params_for_kernel(params, num_hidden)
    x = jax.random.normal(k_x, (batch, num_inputs), jnp.float32)

    out = fcnn_encoder_forward(x, wts, vecs, num_hidden=num_hidden)
    out = jax.block_until_ready(out)

    ref = fcnn_encoder_reference(x, params)
    assert out.shape == (batch, num_hidden)
    assert jnp.allclose(out, ref, atol=1e-4, rtol=1e-4), "mismatch vs reference"

    print("KERNEL_OK")
</pallas_src>

<mosaic_0001>
module attributes {stable_mosaic.version = 11 : i64} {
  func.func @kernel(%arg0: memref<8x16xf32, #tpu.memory_space<vmem>>, %arg1: memref<16x128xf32, #tpu.memory_space<vmem>>, %arg2: memref<128x128xf32, #tpu.memory_space<vmem>>, %arg3: memref<128x128xf32, #tpu.memory_space<vmem>>, %arg4: memref<5x128xf32, #tpu.memory_space<vmem>>, %arg5: memref<8x128xf32, #tpu.memory_space<vmem>>) attributes {dimension_semantics = [], scalar_prefetch = 0 : i64, scratch_operands = 0 : i64, tpu.core_type = #tpu.core_type<tc>} {
    %c0 = arith.constant 0 : index
    %c0_0 = arith.constant 0 : index
    %0 = vector.load %arg0[%c0, %c0_0] : memref<8x16xf32, #tpu.memory_space<vmem>>, vector<8x16xf32>
    %c0_1 = arith.constant 0 : index
    %c0_2 = arith.constant 0 : index
    %1 = vector.load %arg1[%c0_1, %c0_2] : memref<16x128xf32, #tpu.memory_space<vmem>>, vector<16x128xf32>
    %cst = arith.constant dense<0.000000e+00> : vector<8x128xf32>
    %2 = tpu.matmul %0, %1, %cst {dimension_numbers = #tpu.dot_dimension_numbers<[1], [0], [0], [1], [0, 0, 1, 1], [], []>} : vector<8x16xf32>, vector<16x128xf32>, vector<8x128xf32> -> vector<8x128xf32>
    %c0_3 = arith.constant 0 : index
    %c0_4 = arith.constant 0 : index
    %3 = vector.load %arg4[%c0_3, %c0_4] : memref<5x128xf32, #tpu.memory_space<vmem>>, vector<1x128xf32>
    %4 = vector.broadcast %3 : vector<1x128xf32> to vector<8x128xf32>
    %5 = arith.addf %2, %4 : vector<8x128xf32>
    %cst_5 = arith.constant 0.000000e+00 : f32
    %6 = vector.broadcast %cst_5 : f32 to vector<8x128xf32>
    %7 = arith.maximumf %5, %6 : vector<8x128xf32>
    %c0_6 = arith.constant 0 : index
    %c0_7 = arith.constant 0 : index
    %8 = vector.load %arg2[%c0_6, %c0_7] : memref<128x128xf32, #tpu.memory_space<vmem>>, vector<128x128xf32>
    %cst_8 = arith.constant dense<0.000000e+00> : vector<8x128xf32>
    %9 = tpu.matmul %7, %8, %cst_8 {dimension_numbers = #tpu.dot_dimension_numbers<[1], [0], [0], [1], [0, 0, 1, 1], [], []>} : vector<8x128xf32>, vector<128x128xf32>, vector<8x128xf32> -> vector<8x128xf32>
    %c1 = arith.constant 1 : index
    %c0_9 = arith.constant 0 : index
    %10 = vector.load %arg4[%c1, %c0_9] : memref<5x128xf32, #tpu.memory_space<vmem>>, vector<1x128xf32>
    %11 = vector.broadcast %10 : vector<1x128xf32> to vector<8x128xf32>
    %12 = arith.addf %9, %11 : vector<8x128xf32>
    %cst_10 = arith.constant 0.000000e+00 : f32
    %13 = vector.broadcast %cst_10 : f32 to vector<8x128xf32>
    %14 = arith.maximumf %12, %13 : vector<8x128xf32>
    %c0_11 = arith.constant 0 : index
    %c0_12 = arith.constant 0 : index
    %15 = vector.load %arg3[%c0_11, %c0_12] : memref<128x128xf32, #tpu.memory_space<vmem>>, vector<128x128xf32>
    %cst_13 = arith.constant dense<0.000000e+00> : vector<8x128xf32>
    %16 = tpu.matmul %14, %15, %cst_13 {dimension_numbers = #tpu.dot_dimension_numbers<[1], [0], [0], [1], [0, 0, 1, 1], [], []>} : vector<8x128xf32>, vector<128x128xf32>, vector<8x128xf32> -> vector<8x128xf32>
    %c2 = arith.constant 2 : index
    %c0_14 = arith.constant 0 : index
    %17 = vector.load %arg4[%c2, %c0_14] : memref<5x128xf32, #tpu.memory_space<vmem>>, vector<1x128xf32>
    %18 = vector.broadcast %17 : vector<1x128xf32> to vector<8x128xf32>
    %19 = arith.addf %16, %18 : vector<8x128xf32>
    %cst_15 = arith.constant 0.000000e+00 : f32
    %20 = vector.broadcast %cst_15 : f32 to vector<8x128xf32>
    %21 = arith.maximumf %19, %20 : vector<8x128xf32>
    %c3 = arith.constant 3 : index
    %c0_16 = arith.constant 0 : index
    %22 = vector.load %arg4[%c3, %c0_16] : memref<5x128xf32, #tpu.memory_space<vmem>>, vector<1x128xf32>
    %c4 = arith.constant 4 : index
    %c0_17 = arith.constant 0 : index
    %23 = vector.load %arg4[%c4, %c0_17] : memref<5x128xf32, #tpu.memory_space<vmem>>, vector<1x128xf32>
    %24 = vector.broadcast %22 : vector<1x128xf32> to vector<8x128xf32>
    %25 = arith.mulf %21, %24 : vector<8x128xf32>
    %26 = vector.broadcast %23 : vector<1x128xf32> to vector<8x128xf32>
    %27 = arith.addf %25, %26 : vector<8x128xf32>
    %c0_18 = arith.constant 0 : index
    %c0_19 = arith.constant 0 : index
    %28 = vector.load %arg5[%c0_18, %c0_19] : memref<8x128xf32, #tpu.memory_space<vmem>>, vector<8x128xf32>
    tpu.vector_store %arg5[%c0_18, %c0_19], %27 {strides = array<i32>} : memref<8x128xf32, #tpu.memory_space<vmem>>, vector<8x128xf32>,
    return
  }
}

</mosaic_0001>

<bundles_post_ra>
// kernel: fcnn_encoder_forward.1
= control target key start
LH: loop header
LB: loop body
LE: loop exit
PB: predicated region body
PF: predicated region fallthrough
CT: control target
= control target key end

     0   :  { %10 = vsyncpa [#allocation3], 0  ;;  %s814_s0 = inlined_call_operand.hbm [shape: f32[8,16], index: 0, kind: input, shape index: {}]   ;;  %s815_s1 = inlined_call_operand.hbm [shape: f32[16,128], index: 1, kind: input, shape index: {}]   ;;  %s816_s2 = inlined_call_operand.hbm [shape: f32[128,128], index: 2, kind: input, shape index: {}]   ;;  %s817_s3 = inlined_call_operand.hbm [shape: f32[128,128], index: 3, kind: input, shape index: {}]   ;;  %s818_s4 = inlined_call_operand.vmem [shape: f32[5,128], index: 4, kind: input, shape index: {}]   ;;  %s819_s5 = inlined_call_operand.hbm [shape: f32[8,128], index: 5, kind: output, shape index: {}]  }
   0x1   :  { %11 = vsyncpa [#allocation6], 0 }
   0x2   :  { %12 = vsyncpa [#allocation9], 0 }
   0x3   :  { %13 = vsyncpa [#allocation4], 0  ;;  %s670_s18 = smov [#allocation5]   ;;  %s552_s22 = scalar_lea.hbm %s815_s1, 256 }
   0x4   :  { %s29_s19 = sshll.u32 %s670_s18, 4  ;;  %p553_p0 = scmp.ne.s32.totalorder %s815_s1, %s552_s22  ;;  %s30_s19 = int_to_ptr.vmem [resolvable:$true] %s29_s19 }
   0x5   :  { %p556_p1 = scmp.lt.u32.totalorder %s552_s22, %s815_s1 }
   0x7   :  { %p558_p2 = pnand %p556_p1, %p553_p0 }
   0x9   :  { %561 = shalt.err (!%p558_p2)
}
   0xa   :  { %s562_s27 = scalar_lea.vmem %s30_s19, 256  ;;  %p567_p4 = scmp.lt.s32.totalorder %s30_s19, %s30_s19 }
   0xb   :  { %p563_p3 = scmp.ne.s32.totalorder %s30_s19, %s562_s27  ;;  %p568_p5 = scmp.lt.s32.totalorder %s562_s27, %s562_s27 }
   0xd   :  { %p569_p6 = por %p568_p5, %p567_p4 }
   0xf   :  { %p570_p7 = pnand %p569_p6, %p563_p3 }
  0x11   :  { %573 = shalt.err (!%p570_p7)
}
  0x12   :  { %s671_s28 = smov 128   ;;  %s672_s29 = smov 8  }
  0x13   :  { %35 = dma.hbm_to_vmem [thread:$0]  %s815_s1, 256, %s30_s19, [#allocation6], %s671_s28, %s671_s28, %s672_s29  }
  0x14   :  { %s673_s7 = smov [#allocation2]   ;;  %s674_s9 = smov [#allocation7]  }
  0x15   :  { %s20_s8 = sshll.u32 %s673_s7, 4  ;;  %s41_s10 = sshll.u32 %s674_s9, 4  ;;  %s21_s8 = int_to_ptr.vmem [resolvable:$true] %s20_s8  ;;  %s42_s10 = int_to_ptr.vmem [resolvable:$true] %s41_s10 }
  0x16   :  { %s574_s13 = scalar_lea.hbm %s814_s0, 128 }
  0x17   :  { %p575_p8 = scmp.ne.s32.totalorder %s814_s0, %s574_s13  ;;  %p578_p9 = scmp.lt.u32.totalorder %s574_s13, %s814_s0 }
  0x19   :  { %p580_p10 = pnand %p578_p9, %p575_p8 }
  0x1b   :  { %583 = shalt.err (!%p580_p10)
}
  0x1c   :  { %s584_s1 = scalar_lea.vmem %s21_s8, 128  ;;  %p589_p12 = scmp.lt.s32.totalorder %s21_s8, %s21_s8 }
  0x1d   :  { %p585_p11 = scmp.ne.s32.totalorder %s21_s8, %s584_s1  ;;  %p590_p13 = scmp.lt.s32.totalorder %s584_s1, %s584_s1 }
  0x1f   :  { %p591_p0 = por %p590_p13, %p589_p12 }
  0x21   :  { %p592_p1 = pnand %p591_p0, %p585_p11 }
  0x23   :  { %595 = shalt.err (!%p592_p1)
}
  0x24   :  { %23 = dma.hbm_to_vmem [thread:$0]  %s814_s0, 128, %s21_s8, [#allocation3]  }
  0x25   :  { %s596_s22 = scalar_lea.hbm %s816_s2, 2048 }
  0x26   :  { %p597_p2 = scmp.ne.s32.totalorder %s816_s2, %s596_s22  ;;  %p600_p3 = scmp.lt.u32.totalorder %s596_s22, %s816_s2 }
  0x28   :  { %p602_p4 = pnand %p600_p3, %p597_p2 }
  0x2a   :  { %605 = shalt.err (!%p602_p4)
}
  0x2b   :  { %s606_s27 = scalar_lea.vmem %s42_s10, 2048  ;;  %p611_p6 = scmp.lt.s32.totalorder %s42_s10, %s42_s10 }
  0x2c   :  { %p607_p5 = scmp.ne.s32.totalorder %s42_s10, %s606_s27  ;;  %p612_p7 = scmp.lt.s32.totalorder %s606_s27, %s606_s27 }
  0x2e   :  { %p613_p8 = por %p612_p7, %p611_p6 }
  0x30   :  { %p614_p9 = pnand %p613_p8, %p607_p5 }
  0x32   :  { %617 = shalt.err (!%p614_p9)
}
  0x33   :  { %47 = dma.hbm_to_vmem [thread:$0]  %s816_s2, 2048, %s42_s10, [#allocation6], %s671_s28, %s671_s28, %s672_s29  }
  0x34   :  { %s675_s6 = smov [#allocation8]   ;;  %s618_s11 = scalar_lea.hbm %s817_s3, 2048 }
  0x35   :  { %s53_s7 = sshll.u32 %s675_s6, 4  ;;  %p619_p10 = scmp.ne.s32.totalorder %s817_s3, %s618_s11  ;;  %s54_s7 = int_to_ptr.vmem [resolvable:$true] %s53_s7 }
  0x36   :  { %p622_p11 = scmp.lt.u32.totalorder %s618_s11, %s817_s3 }
  0x38   :  { %p624_p12 = pnand %p622_p11, %p619_p10 }
  0x3a   :  { %627 = shalt.err (!%p624_p12)
}
  0x3b   :  { %s628_s16 = scalar_lea.vmem %s54_s7, 2048  ;;  %p633_p0 = scmp.lt.s32.totalorder %s54_s7, %s54_s7 }
  0x3c   :  { %p629_p13 = scmp.ne.s32.totalorder %s54_s7, %s628_s16  ;;  %p634_p1 = scmp.lt.s32.totalorder %s628_s16, %s628_s16 }
  0x3e   :  { %p635_p2 = por %p634_p1, %p633_p0 }
  0x40   :  { %p636_p3 = pnand %p635_p2, %p629_p13 }
  0x42   :  { %639 = shalt.err (!%p636_p3)
}
  0x43   :  { %59 = dma.hbm_to_vmem [thread:$0]  %s817_s3, 2048, %s54_s7, [#allocation9], %s671_s28, %s671_s28, %s672_s29  }
  0x44   :  { %662 = dma.done.wait [#allocation3], 128  }
  0x45   :  { %663 = vsyncadd [#allocation3], 4294967168 }
  0x46   :  { %664 = dma.done.wait [#allocation6], 2304  }
  0x47   :  { %665 = vsyncadd [#allocation6], 4294964992 }
  0x48   :  { %666 = dma.done.wait [#allocation9], 2048  }
  0x49   :  { %667 = vsyncadd [#allocation9], 4294965248  ;;  %v676_v0 = vmov 0.0|0.0   ;;  %vm677_vm0 = vmmov 0   ;;  %v678_v1 = vmov 0.0   ;;  %v75_v2 = vld [vmem:[#allocation5] sm:$0xff] }
  0x4a   :  { %491 = vmatprep.subr.bf16.mxu0 %v676_v0  ;;  %418 = vmatprep.mubr.msk.f32.mxu0 %vm677_vm0, %v678_v1  ;;  %v76_v3 = vld [vmem:[#allocation5 + $0x8] sm:$0xff]  ;;  %v157_v5 = vld [vmem:[#allocation7] sm:$0xff]  ;;  %v158_v6 = vld [vmem:[#allocation7 + $0x8] sm:$0xff]  ;;  %vm82_vm1 = vcmask 130048   ;;  %s679_s23 = smov [#allocation10]  }
  0x4b   :  { %494 = vmatprep.subr.bf16.mxu1 %v676_v0  ;;  %453 = vmatprep.mubr.msk.f32.mxu1 %vm677_vm0, %v678_v1  ;;  %v492_v4 = vpack.c.bf16 %v76_v3, %v75_v2  ;;  %v159_v7 = vld [vmem:[#allocation7 + $0x10] sm:$0xff]  ;;  %v495_v8 = vpack.c.bf16 %v158_v6, %v157_v5  ;;  %v160_v9 = vld [vmem:[#allocation7 + $0x18] sm:$0xff]  ;;  %v74_v10 = vld [vmem:[#allocation2] sm:$0xff]  ;;  %s360_s24 = sshll.u32 %s679_s23, 4  ;;  %s361_s24 = int_to_ptr.vmem [resolvable:$true] %s360_s24 }
  0x4c   :  { %v498_v11 = vpack.c.bf16 %v160_v9, %v159_v7  ;;  %v161_v12 = vld [vmem:[#allocation7 + $0x20] sm:$0xff]  ;;  %v162_v13 = vld [vmem:[#allocation7 + $0x28] sm:$0xff]  ;;  %v163_v15 = vld [vmem:[#allocation7 + $0x30] sm:$0xff]  ;;  %s640_s25 = scalar_lea.vmem %s361_s24, 128  ;;  %p645_p5 = scmp.lt.s32.totalorder %s361_s24, %s361_s24 }
  0x4d   :  { %493 = vmatpush3.bf16.msra.mxu0 %v492_v4  ;;  %496 = vmatpush3.bf16.msra.mxu1 %v495_v8  ;;  %v501_v14 = vpack.c.bf16 %v162_v13, %v161_v12  ;;  %v164_v16 = vld [vmem:[#allocation7 + $0x38] sm:$0xff]  ;;  %v165_v18 = vld [vmem:[#allocation7 + $0x40] sm:$0xff]  ;;  %v166_v19 = vld [vmem:[#allocation7 + $0x48] sm:$0xff]  ;;  %p641_p4 = scmp.ne.s32.totalorder %s361_s24, %s640_s25  ;;  %p646_p6 = scmp.lt.s32.totalorder %s640_s25, %s640_s25 }
  0x4e   :  { %518 = vmatprep.subr.bf16.mxu0 %v676_v0  ;;  %497 = vmatprep.subr.bf16.mxu1 %v676_v0  ;;  %v504_v17 = vpack.c.bf16 %v164_v16, %v163_v15  ;;  %v507_v20 = vpack.c.bf16 %v166_v19, %v165_v18  ;;  %v167_v21 = vld [vmem:[#allocation7 + $0x50] sm:$0xff]  ;;  %v168_v22 = vld [vmem:[#allocation7 + $0x58] sm:$0xff]  ;;  %v169_v24 = vld [vmem:[#allocation7 + $0x60] sm:$0xff] }
  0x4f   :  { %v510_v23 = vpack.c.bf16 %v168_v22, %v167_v21  ;;  %v170_v25 = vld [vmem:[#allocation7 + $0x68] sm:$0xff]  ;;  %v171_v27 = vld [vmem:[#allocation7 + $0x70] sm:$0xff]  ;;  %v172_v28 = vld [vmem:[#allocation7 + $0x78] sm:$0xff]  ;;  %p647_p7 = por %p646_p6, %p645_p5 }
  0x50   :  { %419 = vmatmul.mubr.msk.f32.vlgmr.msra.gmra.mrb[0].mxu0 %vm82_vm1, %v74_v10  ;;  %v513_v26 = vpack.c.bf16 %v170_v25, %v169_v24  ;;  %v516_v29 = vpack.c.bf16 %v172_v28, %v171_v27  ;;  %v249_v30 = vld [vmem:[#allocation8] sm:$0xff]  ;;  %v250_v31 = vld [vmem:[#allocation8 + $0x8] sm:$0xff]  ;;  %v251_v32 = vld [vmem:[#allocation8 + $0x10] sm:$0xff] }
  0x51   :  { %488 = vmatprep.mubr.msk.f32.mxu0 %vm677_vm0, %v678_v1  ;;  %499 = vmatpush3.bf16.msra.mxu1 %v498_v11  ;;  %v519_v33 = vpack.c.bf16 %v250_v31, %v249_v30  ;;  %v252_v34 = vld [vmem:[#allocation8 + $0x18] sm:$0xff]  ;;  %v253_v36 = vld [vmem:[#allocation8 + $0x20] sm:$0xff]  ;;  %v254_v37 = vld [vmem:[#allocation8 + $0x28] sm:$0xff]  ;;  %p648_p8 = pnand %p647_p7, %p641_p4 }
  0x52   :  { %500 = vmatprep.subr.bf16.mxu1 %v676_v0  ;;  %v522_v35 = vpack.c.bf16 %v252_v34, %v251_v32  ;;  %v525_v38 = vpack.c.bf16 %v254_v37, %v253_v36  ;;  %v255_v39 = vld [vmem:[#allocation8 + $0x30] sm:$0xff]  ;;  %v256_v40 = vld [vmem:[#allocation8 + $0x38] sm:$0xff]  ;;  %v257_v42 = vld [vmem:[#allocation8 + $0x40] sm:$0xff] }
  0x53   :  { %520 = vmatpush3.bf16.msra.mxu0 %v519_v33  ;;  %v528_v41 = vpack.c.bf16 %v256_v40, %v255_v39  ;;  %v258_v43 = vld [vmem:[#allocation8 + $0x48] sm:$0xff]  ;;  %v259_v45 = vld [vmem:[#allocation8 + $0x50] sm:$0xff]  ;;  %v260_v46 = vld [vmem:[#allocation8 + $0x58] sm:$0xff] }
  0x54   :  { %521 = vmatprep.subr.bf16.mxu0 %v676_v0  ;;  %v531_v44 = vpack.c.bf16 %v258_v43, %v257_v42  ;;  %v534_v47 = vpack.c.bf16 %v260_v46, %v259_v45  ;;  %v261_v48 = vld [vmem:[#allocation8 + $0x60] sm:$0xff]  ;;  %v262_v49 = vld [vmem:[#allocation8 + $0x68] sm:$0xff]  ;;  %v263_v56 = vld [vmem:[#allocation8 + $0x70] sm:$0xff] }
  0x55   :  { %502 = vmatpush3.bf16.msra.mxu1 %v501_v14  ;;  %v537_v50 = vpack.c.bf16 %v262_v49, %v261_v48  ;;  %v371_v51 = vld [vmem:[%s818_s4] ss:$0 sm:$0xff]  ;;  %v264_v57 = vld [vmem:[#allocation8 + $0x78] sm:$0xff]  ;;  %v373_v59 = vld [vmem:[%s818_s4 + $0x1] ss:$0 sm:$0xff] }
  0x56   :  { %503 = vmatprep.subr.bf16.mxu1 %v676_v0  ;;  %v540_v58 = vpack.c.bf16 %v264_v57, %v263_v56  ;;  %v375_v4 = vld [vmem:[%s818_s4 + $0x3] ss:$0 sm:$0xff]  ;;  %v376_v6 = vld [vmem:[%s818_s4 + $0x4] ss:$0 sm:$0xff] }
  0x57   :  { %523 = vmatpush3.bf16.msra.mxu0 %v522_v35 }
  0x58   :  { %524 = vmatprep.subr.bf16.mxu0 %v676_v0 }
  0x59   :  { %505 = vmatpush3.bf16.msra.mxu1 %v504_v17 }
  0x5a   :  { %506 = vmatprep.subr.bf16.mxu1 %v676_v0 }
  0x5b   :  { %526 = vmatpush3.bf16.msra.mxu0 %v525_v38 }
  0x5c   :  { %527 = vmatprep.subr.bf16.mxu0 %v676_v0 }
  0x5d   :  { %508 = vmatpush3.bf16.msra.mxu1 %v507_v20 }
  0x5e   :  { %509 = vmatprep.subr.bf16.mxu1 %v676_v0 }
  0x5f   :  { %529 = vmatpush3.bf16.msra.mxu0 %v528_v41 }
  0x60   :  { %530 = vmatprep.subr.bf16.mxu0 %v676_v0 }
  0x61   :  { %511 = vmatpush3.bf16.msra.mxu1 %v510_v23 }
  0x62   :  { %512 = vmatprep.subr.bf16.mxu1 %v676_v0 }
  0x63   :  { %532 = vmatpush3.bf16.msra.mxu0 %v531_v44 }
  0x64   :  { %533 = vmatprep.subr.bf16.mxu0 %v676_v0 }
  0x65   :  { %514 = vmatpush3.bf16.msra.mxu1 %v513_v26 }
  0x66   :  { %515 = vmatprep.subr.bf16.mxu1 %v676_v0 }
  0x67   :  { %535 = vmatpush3.bf16.msra.mxu0 %v534_v47 }
  0x68   :  { %536 = vmatprep.subr.bf16.mxu0 %v676_v0 }
  0x69   :  { %517 = vmatpush3.bf16.msra.mxu1 %v516_v29 }
  0x6b   :  { %538 = vmatpush3.bf16.msra.mxu0 %v537_v50 }
  0x6c   :  { %539 = vmatprep.subr.bf16.mxu0 %v676_v0  ;;  %v374_v0 = vld [vmem:[%s818_s4 + $0x2] ss:$0 sm:$0xff] }
  0x6f   :  { %541 = vmatpush3.bf16.msra.mxu0 %v540_v58 }
 0x123   :  { %v152_v52 = vpop.f32.mrb[0].mxu0 }
 0x124   :  { %v153_v53 = vadd.f32 %v371_v51, %v152_v52  ;;  %v420_v54 = vpop.f32.mrb[1].mxu0 }
 0x126   :  { %v156_v55 = vmax.f32 %v153_v53, 0.0 }
 0x128   :  { %454 = vmatmul.mubr.f32.vlgmr.msra.gmra.mrb[0].mxu1 %v156_v55 }
 0x1fb   :  { %v244_v60 = vpop.f32.mrb[0].mxu1 }
 0x1fc   :  { %v245_v61 = vadd.f32 %v373_v59, %v244_v60  ;;  %v455_v62 = vpop.f32.mrb[1].mxu1 }
 0x1fe   :  { %v248_v63 = vmax.f32 %v245_v61, 0.0 }
 0x200   :  { %489 = vmatmul.mubr.f32.vlgmr.msra.gmra.mrb[2].mxu0 %v248_v63 }
 0x2d3   :  { %v336_v1 = vpop.f32.mrb[2].mxu0 }
 0x2d4   :  { %v337_v2 = vadd.f32 %v374_v0, %v336_v1  ;;  %v490_v3 = vpop.f32.mrb[3].mxu0 }
 0x2d6   :  { %v340_v5 = vmax.f32 %v337_v2, 0.0 }
 0x2d8   :  { %v347_v7 = vmul.f32 %v375_v4, %v340_v5 }
 0x2da   :  { %v352_v8 = vadd.f32 %v376_v6, %v347_v7 }
 0x2dc   :  { %353 = vst [vmem:[#allocation10] sm:$0xff] %v352_v8 }
 0x2dd   :  { %651 = shalt.err (!%p648_p8)
}
 0x2de   :  { %s652_s0 = scalar_lea.hbm %s819_s5, 128 }
 0x2df   :  { %p653_p9 = scmp.ne.s32.totalorder %s819_s5, %s652_s0  ;;  %p656_p10 = scmp.lt.u32.totalorder %s652_s0, %s819_s5 }
 0x2e1   :  { %p658_p11 = pnand %p656_p10, %p653_p9 }
 0x2e3   :  { %661 = shalt.err (!%p658_p11)
}
 0x2e4   :  { %363 = dma.vmem_to_hbm [thread:$0]  %s361_s24, 128, %s819_s5, [#allocation4]  }
 0x2e5   :  { %668 = dma.done.wait [#allocation4], 128  }
 0x2e6   :  { %669 = vsyncadd [#allocation4], 4294967168 }
 0x2e7   :  { %367 = vsyncpa [#allocation3], 1 }
 0x2e8   :  { %368 = vsyncpa [#allocation6], 1 }
 0x2e9   :  { %369 = vsyncpa [#allocation9], 1 }
 0x2ea   :  { %370 = vsyncpa [#allocation4], 1 }

</bundles_post_ra>
